<compile_context>
chip_gen: v6e
topology: v6e:2x2x1
jax: 0.10.0
libtpu: 0.0.40
codegen_flags: <defaults>
</compile_context>

<pallas_src>
import jax
import jax.numpy as jnp
from jax import lax
from jax.experimental import pallas as pl
from jax.experimental.pallas import tpu as pltpu

EPS = 1e-5


def _mlp_kernel(x_ref,
                w1_ref, t1_ref,
                w2_ref, t2_ref,
                w3_ref, t3_ref,
                w4_ref, b4_ref,
                o_ref):
    # Layers 1-3: Linear + folded (eval-mode) BatchNorm + ReLU.
    # Dropout(0.2) is identity in eval mode.  MXU matmuls in bf16, f32 accum.
    h = jnp.dot(x_ref[...], w1_ref[...], preferred_element_type=jnp.float32)
    h = jnp.maximum(h + t1_ref[...], 0.0).astype(jnp.bfloat16)

    h = jnp.dot(h, w2_ref[...], preferred_element_type=jnp.float32)
    h = jnp.maximum(h + t2_ref[...], 0.0).astype(jnp.bfloat16)

    h = jnp.dot(h, w3_ref[...], preferred_element_type=jnp.float32)
    h = jnp.maximum(h + t3_ref[...], 0.0).astype(jnp.bfloat16)

    # Head: [1,128] LHS contracted against h's last dim -> [1, tile_b].
    # Lane-dense result row => unmasked, dense output store.
    out = lax.dot_general(w4_ref[...], h, (((1,), (1,)), ((), ())),
                          preferred_element_type=jnp.float32)
    out = out + b4_ref[...]
    o_ref[...] = out[None].astype(o_ref.dtype)


def fold_params(params):
    """Fold eval-mode BatchNorm into the preceding Linear layers.

    Called ONCE outside the per-call path; the folded bf16 weights are then
    HBM-resident constants reused by every forward call.
    """
    (w1, b1, g1, be1, m1, v1,
     w2, b2, g2, be2, m2, v2,
     w3, b3, g3, be3, m3, v3,
     w4, b4) = params

    def fold(w, b, gamma, beta, mean, var):
        s = gamma / jnp.sqrt(var + EPS)                       # f32 fold
        w_f = (w * s[None, :]).astype(jnp.bfloat16)           # cast product only
        t = (b * s + beta - mean * s)[None, :].astype(jnp.float32)
        return w_f, t

    w1f, t1 = fold(w1, b1, g1, be1, m1, v1)
    w2f, t2 = fold(w2, b2, g2, be2, m2, v2)
    w3f, t3 = fold(w3, b3, g3, be3, m3, v3)
    w4_row = w4.T.astype(jnp.bfloat16)                        # [1, 128]
    b4r = b4.reshape(1, 1).astype(jnp.float32)                # [1, 1]
    return (w1f, t1, w2f, t2, w3f, t3, w4_row, b4r)


def _choose_tile(B, tile_b=None):
    if tile_b is not None:
        return max(8, (tile_b // 8) * 8)
    b8 = max(8, ((B + 7) // 8) * 8)
    # One grid step for small/medium batches: per-step fixed cost (~0.35us)
    # dominates this overhead-bound kernel.  Split into 512-row tiles only when
    # each tile still fills the MXU M dimension.
    if b8 <= 1024:
        return b8
    return 512


def hit_order_classifier_forward(x, folded, *, tile_b=None):
    """Fused eval-mode forward. x: [B, input_dim] float; returns [B, 1] f32."""
    B, D = x.shape
    tile_b = _choose_tile(B, tile_b)
    num_tiles = pl.cdiv(B, tile_b)

    # x is the only per-tile streamed input: cast to bf16 once here (the kernel
    # truncates to bf16 anyway).  No host-side jnp.pad: a partial last tile
    # reads unspecified rows which stay row-local through the MLP and are
    # sliced off below.
    x = x.astype(jnp.bfloat16)

    def const_spec(arr):
        # Grid-invariant weights/biases: constant index_map keeps them resident
        # in VMEM across grid steps (no per-step re-DMA).
        return pl.BlockSpec(arr.shape, lambda i: (0,) * arr.ndim)

    in_specs = [pl.BlockSpec((tile_b, D), lambda i: (i, 0))]       # x tile
    in_specs += [const_spec(a) for a in folded]
    # Lane-dense output: one [1, 1, tile_b] row per grid step.
    out_spec = pl.BlockSpec((1, 1, tile_b), lambda i: (i, 0, 0))

    out = pl.pallas_call(
        _mlp_kernel,
        out_shape=jax.ShapeDtypeStruct((num_tiles, 1, tile_b), jnp.float32),
        grid_spec=pltpu.PrefetchScalarGridSpec(
            num_scalar_prefetch=0,
            grid=(num_tiles,),
            in_specs=in_specs,
            out_specs=out_spec,
        ),
        compiler_params=pltpu.CompilerParams(
            # Batch tiles are independent -> megacore-shardable on v7x.
            dimension_semantics=("parallel",),
        ),
    )(x, *folded)

    return out.reshape(num_tiles * tile_b, 1)[:B]


def init_params(key, input_dim):
    """Deterministic init matching the module's parameter shapes."""
    dims = [(input_dim, 512), (512, 256), (256, 128), (128, 1)]
    keys = jax.random.split(key, 16)
    k = iter(keys)
    params = []
    for idx, (fan_in, fan_out) in enumerate(dims):
        bound = 1.0 / jnp.sqrt(jnp.asarray(fan_in, jnp.float32))
        w = jax.random.uniform(next(k), (fan_in, fan_out), jnp.float32, -bound, bound)
        b = jax.random.uniform(next(k), (fan_out,), jnp.float32, -bound, bound)
        params += [w, b]
        if idx < 3:  # BatchNorm1d after first three linears
            gamma = 1.0 + 0.1 * jax.random.normal(next(k), (fan_out,), jnp.float32)
            beta = 0.1 * jax.random.normal(next(k), (fan_out,), jnp.float32)
            mean = 0.05 * jnp.arange(fan_out, dtype=jnp.float32) / fan_out
            var = 1.0 + 0.01 * jnp.arange(fan_out, dtype=jnp.float32) / fan_out
            params += [gamma, beta, mean, var]
    return tuple(params)


def reference_forward(x, params):
    """Pure-JAX f32 reference (eval mode), for correctness checking."""
    (w1, b1, g1, be1, m1, v1,
     w2, b2, g2, be2, m2, v2,
     w3, b3, g3, be3, m3, v3,
     w4, b4) = params

    def block(h, w, b, g, be, m, v):
        h = h @ w + b
        h = g * (h - m) / jnp.sqrt(v + EPS) + be
        return jnp.maximum(h, 0.0)

    h = block(x, w1, b1, g1, be1, m1, v1)
    h = block(h, w2, b2, g2, be2, m2, v2)
    h = block(h, w3, b3, g3, be3, m3, v3)
    return h @ w4 + b4


if __name__ == "__main__":
    input_dim = 32
    key = jax.random.PRNGKey(0)
    k_param, k_x1, k_x2, k_x3 = jax.random.split(key, 4)
    params = init_params(k_param, input_dim)
    folded = fold_params(params)   # folded once, reused for every forward call

    def check(x):
        out = jax.block_until_ready(hit_order_classifier_forward(x, folded))
        ref = reference_forward(x, params)
        assert out.shape == (x.shape[0], 1)
        assert jnp.allclose(out, ref, atol=5e-2, rtol=5e-2), \
            f"max abs err {float(jnp.max(jnp.abs(out - ref)))}"

    # Single full tile (16 rows, one grid step, no padding anywhere).
    check(jax.random.normal(k_x1, (16, input_dim), jnp.float32))
    # Ragged batch (20 rows -> one 24-row block, partial input read).
    check(jax.random.normal(k_x2, (20, input_dim), jnp.float32))
    # Multi-tile path (1300 rows -> 3 tiles of 512, partial last tile).
    check(jax.random.normal(k_x3, (1300, input_dim), jnp.float32))

    # TODO(synk): Dropout(0.2) and BatchNorm training-mode batch statistics are
    # not implemented (eval-mode semantics are used, matching model.eval()).
    print("KERNEL_OK")
</pallas_src>

<mosaic_0001>
module attributes {stable_mosaic.version = 11 : i64} {
  func.func @_mlp_kernel(%arg0: i32, %arg1: memref<16x32xbf16, #tpu.memory_space<vmem>>, %arg2: memref<32x512xbf16, #tpu.memory_space<vmem>>, %arg3: memref<1x512xf32, #tpu.memory_space<vmem>>, %arg4: memref<512x256xbf16, #tpu.memory_space<vmem>>, %arg5: memref<1x256xf32, #tpu.memory_space<vmem>>, %arg6: memref<256x128xbf16, #tpu.memory_space<vmem>>, %arg7: memref<1x128xf32, #tpu.memory_space<vmem>>, %arg8: memref<1x128xbf16, #tpu.memory_space<vmem>>, %arg9: memref<1x1xf32, #tpu.memory_space<vmem>>, %arg10: memref<1x1x16xf32, #tpu.memory_space<vmem>>) attributes {dimension_semantics = [#tpu.dimension_semantics<parallel>], iteration_bounds = array<i64: 1>, scalar_prefetch = 0 : i64, scratch_operands = 0 : i64, tpu.core_type = #tpu.core_type<tc>, window_params = [{transform_indices = @transform_0, window_bounds = array<i64: 16, 32>}, {pipeline_mode = #tpu.pipeline_mode<synchronous>, transform_indices = @transform_1, window_bounds = array<i64: 32, 512>}, {pipeline_mode = #tpu.pipeline_mode<synchronous>, transform_indices = @transform_2, window_bounds = array<i64: 1, 512>}, {pipeline_mode = #tpu.pipeline_mode<synchronous>, transform_indices = @transform_3, window_bounds = array<i64: 512, 256>}, {pipeline_mode = #tpu.pipeline_mode<synchronous>, transform_indices = @transform_4, window_bounds = array<i64: 1, 256>}, {pipeline_mode = #tpu.pipeline_mode<synchronous>, transform_indices = @transform_5, window_bounds = array<i64: 256, 128>}, {pipeline_mode = #tpu.pipeline_mode<synchronous>, transform_indices = @transform_6, window_bounds = array<i64: 1, 128>}, {pipeline_mode = #tpu.pipeline_mode<synchronous>, transform_indices = @transform_7, window_bounds = array<i64: 1, 128>}, {pipeline_mode = #tpu.pipeline_mode<synchronous>, transform_indices = @transform_8, window_bounds = array<i64: 1, 1>}, {transform_indices = @transform_9, window_bounds = array<i64: 1, 1, 16>}]} {
    %c0 = arith.constant 0 : index
    %c0_0 = arith.constant 0 : index
    %0 = vector.load %arg1[%c0, %c0_0] : memref<16x32xbf16, #tpu.memory_space<vmem>>, vector<16x32xbf16>
    %c0_1 = arith.constant 0 : index
    %c0_2 = arith.constant 0 : index
    %1 = vector.load %arg2[%c0_1, %c0_2] : memref<32x512xbf16, #tpu.memory_space<vmem>>, vector<32x512xbf16>
    %cst = arith.constant dense<0.000000e+00> : vector<16x512xf32>
    %2 = tpu.matmul %0, %1, %cst {dimension_numbers = #tpu.dot_dimension_numbers<[1], [0], [0], [1], [0, 0, 1, 1], [], []>} : vector<16x32xbf16>, vector<32x512xbf16>, vector<16x512xf32> -> vector<16x512xf32>
    %c0_3 = arith.constant 0 : index
    %c0_4 = arith.constant 0 : index
    %3 = vector.load %arg3[%c0_3, %c0_4] : memref<1x512xf32, #tpu.memory_space<vmem>>, vector<1x512xf32>
    %4 = vector.broadcast %3 : vector<1x512xf32> to vector<16x512xf32>
    %5 = arith.addf %2, %4 : vector<16x512xf32>
    %cst_5 = arith.constant 0.000000e+00 : f32
    %6 = vector.broadcast %cst_5 : f32 to vector<16x512xf32>
    %7 = arith.maximumf %5, %6 : vector<16x512xf32>
    %8 = arith.truncf %7 : vector<16x512xf32> to vector<16x512xbf16>
    %c0_6 = arith.constant 0 : index
    %c0_7 = arith.constant 0 : index
    %9 = vector.load %arg4[%c0_6, %c0_7] : memref<512x256xbf16, #tpu.memory_space<vmem>>, vector<512x256xbf16>
    %cst_8 = arith.constant dense<0.000000e+00> : vector<16x256xf32>
    %10 = tpu.matmul %8, %9, %cst_8 {dimension_numbers = #tpu.dot_dimension_numbers<[1], [0], [0], [1], [0, 0, 1, 1], [], []>} : vector<16x512xbf16>, vector<512x256xbf16>, vector<16x256xf32> -> vector<16x256xf32>
    %c0_9 = arith.constant 0 : index
    %c0_10 = arith.constant 0 : index
    %11 = vector.load %arg5[%c0_9, %c0_10] : memref<1x256xf32, #tpu.memory_space<vmem>>, vector<1x256xf32>
    %12 = vector.broadcast %11 : vector<1x256xf32> to vector<16x256xf32>
    %13 = arith.addf %10, %12 : vector<16x256xf32>
    %cst_11 = arith.constant 0.000000e+00 : f32
    %14 = vector.broadcast %cst_11 : f32 to vector<16x256xf32>
    %15 = arith.maximumf %13, %14 : vector<16x256xf32>
    %16 = arith.truncf %15 : vector<16x256xf32> to vector<16x256xbf16>
    %c0_12 = arith.constant 0 : index
    %c0_13 = arith.constant 0 : index
    %17 = vector.load %arg6[%c0_12, %c0_13] : memref<256x128xbf16, #tpu.memory_space<vmem>>, vector<256x128xbf16>
    %cst_14 = arith.constant dense<0.000000e+00> : vector<16x128xf32>
    %18 = tpu.matmul %16, %17, %cst_14 {dimension_numbers = #tpu.dot_dimension_numbers<[1], [0], [0], [1], [0, 0, 1, 1], [], []>} : vector<16x256xbf16>, vector<256x128xbf16>, vector<16x128xf32> -> vector<16x128xf32>
    %c0_15 = arith.constant 0 : index
    %c0_16 = arith.constant 0 : index
    %19 = vector.load %arg7[%c0_15, %c0_16] : memref<1x128xf32, #tpu.memory_space<vmem>>, vector<1x128xf32>
    %20 = vector.broadcast %19 : vector<1x128xf32> to vector<16x128xf32>
    %21 = arith.addf %18, %20 : vector<16x128xf32>
    %cst_17 = arith.constant 0.000000e+00 : f32
    %22 = vector.broadcast %cst_17 : f32 to vector<16x128xf32>
    %23 = arith.maximumf %21, %22 : vector<16x128xf32>
    %24 = arith.truncf %23 : vector<16x128xf32> to vector<16x128xbf16>
    %c0_18 = arith.constant 0 : index
    %c0_19 = arith.constant 0 : index
    %25 = vector.load %arg8[%c0_18, %c0_19] : memref<1x128xbf16, #tpu.memory_space<vmem>>, vector<1x128xbf16>
    %cst_20 = arith.constant dense<0.000000e+00> : vector<1x16xf32>
    %26 = tpu.matmul %25, %24, %cst_20 {dimension_numbers = #tpu.dot_dimension_numbers<[1], [1], [0], [0], [0, 0, 1, 0], [], []>} : vector<1x128xbf16>, vector<16x128xbf16>, vector<1x16xf32> -> vector<1x16xf32>
    %c0_21 = arith.constant 0 : index
    %c0_22 = arith.constant 0 : index
    %27 = vector.load %arg9[%c0_21, %c0_22] : memref<1x1xf32, #tpu.memory_space<vmem>>, vector<1x1xf32>
    %28 = vector.broadcast %27 : vector<1x1xf32> to vector<1x16xf32>
    %29 = arith.addf %26, %28 : vector<1x16xf32>
    %30 = vector.shape_cast %29 : vector<1x16xf32> to vector<1x1x16xf32>
    %c0_23 = arith.constant 0 : index
    %c0_24 = arith.constant 0 : index
    %c0_25 = arith.constant 0 : index
    %31 = vector.load %arg10[%c0_23, %c0_24, %c0_25] : memref<1x1x16xf32, #tpu.memory_space<vmem>>, vector<1x1x16xf32>
    tpu.vector_store %arg10[%c0_23, %c0_24, %c0_25], %30 {strides = array<i32>} : memref<1x1x16xf32, #tpu.memory_space<vmem>>, vector<1x1x16xf32>,
    return
  }
  func.func @transform_0(%arg0: i32) -> (i32, i32) {
    %c0_i32 = arith.constant 0 : i32
    %c0_i32_0 = arith.constant 0 : i32
    return %arg0, %c0_i32 : i32, i32
  }
  func.func @transform_1(%arg0: i32) -> (i32, i32) {
    %c0_i32 = arith.constant 0 : i32
    %c0_i32_0 = arith.constant 0 : i32
    %c0_i32_1 = arith.constant 0 : i32
    return %c0_i32, %c0_i32_0 : i32, i32
  }
  func.func @transform_2(%arg0: i32) -> (i32, i32) {
    %c0_i32 = arith.constant 0 : i32
    %c0_i32_0 = arith.constant 0 : i32
    %c0_i32_1 = arith.constant 0 : i32
    return %c0_i32, %c0_i32_0 : i32, i32
  }
  func.func @transform_3(%arg0: i32) -> (i32, i32) {
    %c0_i32 = arith.constant 0 : i32
    %c0_i32_0 = arith.constant 0 : i32
    %c0_i32_1 = arith.constant 0 : i32
    return %c0_i32, %c0_i32_0 : i32, i32
  }
  func.func @transform_4(%arg0: i32) -> (i32, i32) {
    %c0_i32 = arith.constant 0 : i32
    %c0_i32_0 = arith.constant 0 : i32
    %c0_i32_1 = arith.constant 0 : i32
    return %c0_i32, %c0_i32_0 : i32, i32
  }
  func.func @transform_5(%arg0: i32) -> (i32, i32) {
    %c0_i32 = arith.constant 0 : i32
    %c0_i32_0 = arith.constant 0 : i32
    %c0_i32_1 = arith.constant 0 : i32
    return %c0_i32, %c0_i32_0 : i32, i32
  }
  func.func @transform_6(%arg0: i32) -> (i32, i32) {
    %c0_i32 = arith.constant 0 : i32
    %c0_i32_0 = arith.constant 0 : i32
    %c0_i32_1 = arith.constant 0 : i32
    return %c0_i32, %c0_i32_0 : i32, i32
  }
  func.func @transform_7(%arg0: i32) -> (i32, i32) {
    %c0_i32 = arith.constant 0 : i32
    %c0_i32_0 = arith.constant 0 : i32
    %c0_i32_1 = arith.constant 0 : i32
    return %c0_i32, %c0_i32_0 : i32, i32
  }
  func.func @transform_8(%arg0: i32) -> (i32, i32) {
    %c0_i32 = arith.constant 0 : i32
    %c0_i32_0 = arith.constant 0 : i32
    %c0_i32_1 = arith.constant 0 : i32
    return %c0_i32, %c0_i32_0 : i32, i32
  }
  func.func @transform_9(%arg0: i32) -> (i32, i32, i32) {
    %c0_i32 = arith.constant 0 : i32
    %c0_i32_0 = arith.constant 0 : i32
    %c0_i32_1 = arith.constant 0 : i32
    return %arg0, %c0_i32, %c0_i32_0 : i32, i32, i32
  }
}

</mosaic_0001>

<bundles_post_ra>
// kernel: tpu_custom_call.1
= control target key start
LH: loop header
LB: loop body
LE: loop exit
PB: predicated region body
PF: predicated region fallthrough
CT: control target
= control target key end

     0   :  { %s1488_s0 = inlined_call_operand.hbm [shape: bf16[16,32], index: 0, kind: input, shape index: {}]   ;;  %s1489_s1 = inlined_call_operand.hbm [shape: bf16[32,512], index: 1, kind: input, shape index: {}]   ;;  %s1490_s2 = inlined_call_operand.vmem [shape: f32[1,512], index: 2, kind: input, shape index: {}]   ;;  %s1491_s3 = inlined_call_operand.hbm [shape: bf16[512,256], index: 3, kind: input, shape index: {}]   ;;  %s1492_s4 = inlined_call_operand.vmem [shape: f32[1,256], index: 4, kind: input, shape index: {}]   ;;  %s1493_s5 = inlined_call_operand.hbm [shape: bf16[256,128], index: 5, kind: input, shape index: {}]   ;;  %s1494_s6 = inlined_call_operand.vmem [shape: f32[1,128], index: 6, kind: input, shape index: {}]   ;;  %s1495_s7 = inlined_call_operand.vmem [shape: bf16[1,128], index: 7, kind: input, shape index: {}]   ;;  %s1496_s8 = inlined_call_operand.<no memory space> [shape: f32[1,1], index: 8, kind: input, shape index: {}]   ;;  %s1497_s9 = inlined_call_operand.hbm [shape: f32[1,1,16], index: 9, kind: output, shape index: {}]  }
   0x1   :  { %v14_v0 = vstv %s1496_s8 }
   0x2   :  { %15 = vst [vmem:[#allocation2] sm:$0x1] %v14_v0 }
   0x3   :  { %16 = vsyncpa [#allocation4], 0 }
   0x4   :  { %17 = vsyncpa [#allocation7], 0 }
   0x5   :  { %18 = vsyncpa [#allocation10], 0 }
   0x6   :  { %19 = vsyncpa [#allocation5], 0  ;;  %s1377_s11 = smov [#allocation6]  }
   0x7   :  { %s37_s12 = sshll.u32 %s1377_s11, 4  ;;  %s38_s12 = int_to_ptr.vmem [resolvable:$true] %s37_s12 }
   0x8   :  { %s1277_s13 = scalar_lea.vmem %s38_s12, 1024  ;;  %p1282_p1 = scmp.lt.s32.totalorder %s38_s12, %s38_s12 }
   0x9   :  { %p1278_p0 = scmp.ne.s32.totalorder %s38_s12, %s1277_s13  ;;  %p1283_p2 = scmp.lt.s32.totalorder %s1277_s13, %s1277_s13 }
   0xb   :  { %p1284_p3 = por %p1283_p2, %p1282_p1 }
   0xd   :  { %p1285_p4 = pnand %p1284_p3, %p1278_p0 }
   0xf   :  { %1288 = shalt.err (!%p1285_p4)
}
  0x10   :  { %s1378_s14 = smov 256   ;;  %s1379_s15 = smov 16  }
  0x11   :  { %43 = dma.hbm_to_vmem [thread:$0]  %s1489_s1, 1024, %s38_s12, [#allocation7], %s1378_s14, %s1378_s14, %s1379_s15  }
  0x12   :  { %s1380_s8 = smov [#allocation3]  }
  0x13   :  { %s25_s18 = sshll.u32 %s1380_s8, 4  ;;  %s26_s18 = int_to_ptr.vmem [resolvable:$true] %s25_s18 }
  0x14   :  { %s1297_s19 = scalar_lea.vmem %s26_s18, 128  ;;  %p1302_p6 = scmp.lt.s32.totalorder %s26_s18, %s26_s18 }
  0x15   :  { %p1298_p5 = scmp.ne.s32.totalorder %s26_s18, %s1297_s19  ;;  %p1303_p7 = scmp.lt.s32.totalorder %s1297_s19, %s1297_s19 }
  0x17   :  { %p1304_p8 = por %p1303_p7, %p1302_p6 }
  0x19   :  { %p1305_p9 = pnand %p1304_p8, %p1298_p5 }
  0x1b   :  { %1308 = shalt.err (!%p1305_p9)
}
  0x1c   :  { %s1381_s20 = smov 64   ;;  %s1382_s21 = smov 4  }
  0x1d   :  { %31 = dma.hbm_to_vmem [thread:$0]  %s1488_s0, 128, %s26_s18, [#allocation4], %s1381_s20, %s1381_s20, %s1382_s21  }
  0x1e   :  { %s1383_s24 = smov [#allocation8]  }
  0x1f   :  { %s51_s25 = sshll.u32 %s1383_s24, 4  ;;  %s52_s25 = int_to_ptr.vmem [resolvable:$true] %s51_s25 }
  0x20   :  { %s1317_s1 = scalar_lea.vmem %s52_s25, 8192  ;;  %p1322_p11 = scmp.lt.s32.totalorder %s52_s25, %s52_s25 }
  0x21   :  { %p1318_p10 = scmp.ne.s32.totalorder %s52_s25, %s1317_s1  ;;  %p1323_p12 = scmp.lt.s32.totalorder %s1317_s1, %s1317_s1 }
  0x23   :  { %p1324_p13 = por %p1323_p12, %p1322_p11 }
  0x25   :  { %p1325_p0 = pnand %p1324_p13, %p1318_p10 }
  0x27   :  { %1328 = shalt.err (!%p1325_p0)
}
  0x28   :  { %s1384_s26 = smov 128   ;;  %s1385_s27 = smov 8  }
  0x29   :  { %57 = dma.hbm_to_vmem [thread:$0]  %s1491_s3, 8192, %s52_s25, [#allocation7], %s1384_s26, %s1384_s26, %s1385_s27  }
  0x2a   :  { %s1386_s30 = smov [#allocation9]  }
  0x2b   :  { %s65_s10 = sshll.u32 %s1386_s30, 4  ;;  %s66_s10 = int_to_ptr.vmem [resolvable:$true] %s65_s10 }
  0x2c   :  { %s1337_s0 = scalar_lea.vmem %s66_s10, 2048  ;;  %p1342_p2 = scmp.lt.s32.totalorder %s66_s10, %s66_s10 }
  0x2d   :  { %p1338_p1 = scmp.ne.s32.totalorder %s66_s10, %s1337_s0  ;;  %p1343_p3 = scmp.lt.s32.totalorder %s1337_s0, %s1337_s0 }
  0x2f   :  { %p1344_p4 = por %p1343_p3, %p1342_p2 }
  0x31   :  { %p1345_p5 = pnand %p1344_p4, %p1338_p1 }
  0x33   :  { %1348 = shalt.err (!%p1345_p5)
}
  0x34   :  { %71 = dma.hbm_to_vmem [thread:$0]  %s1493_s5, 2048, %s66_s10, [#allocation10], %s1381_s20, %s1381_s20, %s1382_s21  }
  0x35   :  { %1369 = dma.done.wait [#allocation4], 128  }
  0x36   :  { %1370 = vsyncadd [#allocation4], 4294967168 }
  0x37   :  { %1371 = dma.done.wait [#allocation7], 9216  }
  0x38   :  { %1372 = vsyncadd [#allocation7], 4294958080 }
  0x39   :  { %1373 = dma.done.wait [#allocation10], 2048  }
  0x3a   :  { %1374 = vsyncadd [#allocation10], 4294965248  ;;  %v1387_v1 = vmov 0   ;;  %v1144_v2 = vld [vmem:[#allocation6 + $0x24] ss:$16 sps:$4 sm:$0xff]   ;;  %v1150_v7 = vld [vmem:[#allocation3] sm:$0xff]  }
  0x3b   :  { %204 = vmatprep.mubr.bf16.mxu1 %v1387_v1  ;;  %1143 = vset.pattern.permute.xlu0 %v1387_v1  ;;  %v1146_v3 = vld [vmem:[#allocation6 + $0x20] ss:$16 sps:$4 sm:$0xff]   ;;  %v1147_v4 = vld [vmem:[#allocation6 + $0x4] ss:$16 sps:$4 sm:$0xff]   ;;  %v1153_v6 = vld [vmem:[#allocation6 + $0x2c] ss:$16 sps:$4 sm:$0xff]  }
  0x3c   :  { %184 = vmatprep.subr.bf16.mxu1 %v1144_v2  ;;  %v1149_v5 = vld [vmem:[#allocation6] ss:$16 sps:$4 sm:$0xff]   ;;  %v1151_v8 = vld [vmem:[#allocation6 + $0x28] ss:$16 sps:$4 sm:$0xff]   ;;  %vm168_vm0 = vcmask 261120   ;;  %vm1389_vm1 = vmmov 0  }
  0x3d   :  { %185 = vmatpush1.bf16.msra.mxu1 %v1146_v3  ;;  %v1157_v9 = vld [vmem:[#allocation8 + $0x74] ss:$8 sps:$4 sm:$0xff]   ;;  %v1159_v10 = vld [vmem:[#allocation8 + $0x70] ss:$8 sps:$4 sm:$0xff]   ;;  %v1160_v12 = vld [vmem:[#allocation8 + $0x64] ss:$8 sps:$4 sm:$0xff]  }
  0x3e   :  { %186 = vmatprep.subr.bf16.mxu1 %v1147_v4  ;;  %v1156_v11 = vld [vmem:[#allocation6 + $0xc] ss:$16 sps:$4 sm:$0xff]   ;;  %666 = vmatprep.subr.bf16.mxu0 %v1157_v9  ;;  %v1162_v13 = vld [vmem:[#allocation8 + $0x60] ss:$8 sps:$4 sm:$0xff]   ;;  %v1165_v17 = vld [vmem:[#allocation8 + $0x170] ss:$8 sps:$4 sm:$0xff]  }
  0x3f   :  { %667 = vmatpush1.bf16.msra.mxu0 %v1159_v10  ;;  %v1154_v14 = vld [vmem:[#allocation6 + $0x8] ss:$16 sps:$4 sm:$0xff]   ;;  %v1163_v15 = vld [vmem:[#allocation8 + $0x54] ss:$8 sps:$4 sm:$0xff]   ;;  %v1169_v19 = vld [vmem:[#allocation8 + $0x44] ss:$8 sps:$4 sm:$0xff]  }
  0x40   :  { %668 = vmatprep.subr.bf16.mxu0 %v1160_v12  ;;  %v1167_v16 = vld [vmem:[#allocation8 + $0x174] ss:$8 sps:$4 sm:$0xff]   ;;  %v1168_v18 = vld [vmem:[#allocation8 + $0x50] ss:$8 sps:$4 sm:$0xff]   ;;  %v1173_v20 = vld [vmem:[#allocation8 + $0x164] ss:$8 sps:$4 sm:$0xff]   ;;  %v103_v12 = vlaneseq }
  0x41   :  { %187 = vmatpush1.bf16.msra.mxu1 %v1149_v5  ;;  %v1174_v21 = vld [vmem:[#allocation8 + $0x40] ss:$8 sps:$4 sm:$0xff]   ;;  %v1175_v23 = vld [vmem:[#allocation8 + $0x34] ss:$8 sps:$4 sm:$0xff]   ;;  %v1177_v25 = vld [vmem:[#allocation8 + $0x150] ss:$8 sps:$4 sm:$0xff]  }
  0x42   :  { %227 = vmatprep.subr.bf16.mxu1 %v1153_v6  ;;  %v1171_v22 = vld [vmem:[#allocation8 + $0x160] ss:$8 sps:$4 sm:$0xff]   ;;  %v1179_v24 = vld [vmem:[#allocation8 + $0x154] ss:$8 sps:$4 sm:$0xff]   ;;  %v1180_v26 = vld [vmem:[#allocation8 + $0x30] ss:$8 sps:$4 sm:$0xff]  }
  0x43   :  { %669 = vmatpush1.bf16.msra.mxu0 %v1162_v13  ;;  %v1181_v27 = vld [vmem:[#allocation8 + $0x24] ss:$8 sps:$4 sm:$0xff]   ;;  %v1186_v29 = vld [vmem:[#allocation8 + $0x20] ss:$8 sps:$4 sm:$0xff]   ;;  %v1187_v31 = vld [vmem:[#allocation8 + $0x14] ss:$8 sps:$4 sm:$0xff]  }
  0x44   :  { %1016 = vmatmul.mubr.msk.bf16.vlgmr.msra.gmra.mxu1 %vm168_vm0, %v1150_v7  ;;  %670 = vmatprep.subr.bf16.mxu0 %v1163_v15  ;;  %v1185_v28 = vld [vmem:[#allocation8 + $0x144] ss:$8 sps:$4 sm:$0xff]   ;;  %v1183_v30 = vld [vmem:[#allocation8 + $0x140] ss:$8 sps:$4 sm:$0xff]   ;;  %v1191_v32 = vld [vmem:[#allocation8 + $0x134] ss:$8 sps:$4 sm:$0xff]  }
  0x45   :  { %228 = vmatpush1.bf16.msra.mxu1 %v1151_v8  ;;  %247 = vmatprep.mubr.bf16.mxu1 %v1387_v1  ;;  %v1189_v33 = vld [vmem:[#allocation8 + $0x130] ss:$8 sps:$4 sm:$0xff]   ;;  %v1193_v35 = vld [vmem:[#allocation8 + $0x4] ss:$8 sps:$4 sm:$0xff]   ;;  %v1198_v37 = vld [vmem:[#allocation8] ss:$8 sps:$4 sm:$0xff]  }
  0x46   :  { %229 = vmatprep.subr.bf16.mxu1 %v1156_v11  ;;  %v1192_v34 = vld [vmem:[#allocation8 + $0x10] ss:$8 sps:$4 sm:$0xff]   ;;  %v1197_v36 = vld [vmem:[#allocation8 + $0x124] ss:$8 sps:$4 sm:$0xff]   ;;  %v1195_v38 = vld [vmem:[#allocation8 + $0x120] ss:$8 sps:$4 sm:$0xff]  }
  0x47   :  { %671 = vmatpush1.bf16.msra.mxu0 %v1168_v18  ;;  %v1199_v39 = vld [vmem:[#allocation8 + $0xf4] ss:$8 sps:$4 sm:$0xff]   ;;  %v1201_v41 = vld [vmem:[#allocation8 + $0x110] ss:$8 sps:$4 sm:$0xff]   ;;  %v1205_v43 = vld [vmem:[#allocation8 + $0xe4] ss:$8 sps:$4 sm:$0xff]  }
  0x48   :  { %672 = vmatprep.subr.bf16.mxu0 %v1169_v19  ;;  %v1203_v40 = vld [vmem:[#allocation8 + $0x114] ss:$8 sps:$4 sm:$0xff]   ;;  %v1204_v42 = vld [vmem:[#allocation8 + $0xf0] ss:$8 sps:$4 sm:$0xff]   ;;  %v1209_v44 = vld [vmem:[#allocation8 + $0x104] ss:$8 sps:$4 sm:$0xff]  }
  0x49   :  { %230 = vmatpush1.bf16.msra.mxu1 %v1154_v14  ;;  %v1210_v45 = vld [vmem:[#allocation8 + $0xe0] ss:$8 sps:$4 sm:$0xff]   ;;  %v1211_v47 = vld [vmem:[#allocation8 + $0xd4] ss:$8 sps:$4 sm:$0xff]   ;;  %v1216_v49 = vld [vmem:[#allocation8 + $0xd0] ss:$8 sps:$4 sm:$0xff]  }
  0x4a   :  { %709 = vmatprep.subr.bf16.mxu1 %v1167_v16  ;;  %v1207_v46 = vld [vmem:[#allocation8 + $0x100] ss:$8 sps:$4 sm:$0xff]   ;;  %v1215_v48 = vld [vmem:[#allocation8 + $0x1f4] ss:$8 sps:$4 sm:$0xff]   ;;  %v1213_v50 = vld [vmem:[#allocation8 + $0x1f0] ss:$8 sps:$4 sm:$0xff]  }
  0x4b   :  { %673 = vmatpush1.bf16.msra.mxu0 %v1174_v21  ;;  %v1217_v51 = vld [vmem:[#allocation8 + $0xc4] ss:$8 sps:$4 sm:$0xff]   ;;  %v1222_v53 = vld [vmem:[#allocation8 + $0xc0] ss:$8 sps:$4 sm:$0xff]   ;;  %v1223_v55 = vld [vmem:[#allocation8 + $0xb4] ss:$8 sps:$4 sm:$0xff]  }
  0x4c   :  { %1017 = vmatmul.mubr.msk.bf16.vlgmr.msra.gmra.mxu1 %vm168_vm0, %v1150_v7  ;;  %674 = vmatprep.subr.bf16.mxu0 %v1175_v23  ;;  %v1221_v52 = vld [vmem:[#allocation8 + $0x1e4] ss:$8 sps:$4 sm:$0xff]   ;;  %v1219_v54 = vld [vmem:[#allocation8 + $0x1e0] ss:$8 sps:$4 sm:$0xff]   ;;  %v1227_v56 = vld [vmem:[#allocation8 + $0x1d4] ss:$8 sps:$4 sm:$0xff]  }
  0x4d   :  { %710 = vmatpush1.bf16.msra.mxu1 %v1165_v17  ;;  %v1228_v57 = vld [vmem:[#allocation8 + $0xb0] ss:$8 sps:$4 sm:$0xff]   ;;  %v1229_v59 = vld [vmem:[#allocation8 + $0xa4] ss:$8 sps:$4 sm:$0xff]   ;;  %v1231_v61 = vld [vmem:[#allocation8 + $0x1c0] ss:$8 sps:$4 sm:$0xff]  }
  0x4e   :  { %711 = vmatprep.subr.bf16.mxu1 %v1173_v20  ;;  %v1225_v58 = vld [vmem:[#allocation8 + $0x1d0] ss:$8 sps:$4 sm:$0xff]   ;;  %v1233_v60 = vld [vmem:[#allocation8 + $0x1c4] ss:$8 sps:$4 sm:$0xff]   ;;  %v1234_v62 = vld [vmem:[#allocation8 + $0xa0] ss:$8 sps:$4 sm:$0xff]  }
  0x4f   :  { %675 = vmatpush1.bf16.msra.mxu0 %v1180_v26  ;;  %v1235_v63 = vld [vmem:[#allocation8 + $0x94] ss:$8 sps:$4 sm:$0xff]   ;;  %v1237_v1 = vld [vmem:[#allocation8 + $0x1b0] ss:$8 sps:$4 sm:$0xff]   ;;  %v1241_v3 = vld [vmem:[#allocation8 + $0x84] ss:$8 sps:$4 sm:$0xff]  }
  0x50   :  { %676 = vmatprep.subr.bf16.mxu0 %v1181_v27  ;;  %v1239_v0 = vld [vmem:[#allocation8 + $0x1b4] ss:$8 sps:$4 sm:$0xff]   ;;  %v1240_v2 = vld [vmem:[#allocation8 + $0x90] ss:$8 sps:$4 sm:$0xff]   ;;  %v1245_v4 = vld [vmem:[#allocation8 + $0x1a4] ss:$8 sps:$4 sm:$0xff]  }
  0x51   :  { %712 = vmatpush1.bf16.msra.mxu1 %v1171_v22  ;;  %v1243_v5 = vld [vmem:[#allocation8 + $0x1a0] ss:$8 sps:$4 sm:$0xff]   ;;  %v1249_v7 = vld [vmem:[#allocation8 + $0x194] ss:$8 sps:$4 sm:$0xff]   ;;  %v1247_v8 = vld [vmem:[#allocation8 + $0x190] ss:$8 sps:$4 sm:$0xff]  }
  0x52   :  { %713 = vmatprep.subr.bf16.mxu1 %v1179_v24  ;;  %v1246_v6 = vld [vmem:[#allocation8 + $0x80] ss:$8 sps:$4 sm:$0xff]   ;;  %v1252_v9 = vld [vmem:[#allocation8 + $0x184] ss:$8 sps:$4 sm:$0xff]   ;;  %v1253_v11 = vld [vmem:[#allocation9 + $0x78] sm:$0xff]   ;;  %v1458_v13 = vshrl.u32 %v103_v12, 7 }
  0x53   :  { %677 = vmatpush1.bf16.msra.mxu0 %v1186_v29  ;;  %v1250_v10 = vld [vmem:[#allocation8 + $0x180] ss:$8 sps:$4 sm:$0xff]   ;;  %v101_v16 = vld [vmem:[%s1490_s2] sm:$0xf]  ;;  %s1390_s17 = smov [#allocation11]   ;;  %vm988_vm2 = vcmask 122880  }
  0x54   :  { %678 = vmatprep.subr.bf16.mxu0 %v1187_v31  ;;  %v109_v14 = vsub.s32 1, %v1458_v13  ;;  %v1462_v15 = vsub.s32 0, %v1458_v13  ;;  %v117_v24 = vsub.s32 3, %v1458_v13  ;;  %v113_v27 = vsub.s32 2, %v1458_v13  ;;  %s996_s8 = sshll.u32 %s1390_s17, 4  ;;  %s997_s8 = int_to_ptr.vmem [resolvable:$true] %s996_s8 }
  0x55   :  { %714 = vmatpush1.bf16.msra.mxu1 %v1177_v25  ;;  %s1353_s18 = scalar_lea.vmem %s997_s8, 32  ;;  %p1354_p7 = scmp.lt.s32.totalorder %s997_s8, %s997_s8 }
  0x56   :  { %715 = vmatprep.subr.bf16.mxu1 %v1185_v28  ;;  %v110_v18 = vrot.slane %v101_v16, %v109_v14  ;;  %v106_v19 = vrot.slane %v101_v16, %v1462_v15 }
  0x57   :  { %679 = vmatpush1.bf16.msra.mxu0 %v1192_v34 }
  0x58   :  { %680 = vmatprep.subr.bf16.mxu0 %v1193_v35  ;;  %v114_v35 = vrot.slane %v101_v16, %v113_v27 }
  0x59   :  { %716 = vmatpush1.bf16.msra.mxu1 %v1183_v30 }
  0x5a   :  { %717 = vmatprep.subr.bf16.mxu1 %v1191_v32 }
  0x5b   :  { %681 = vmatpush1.bf16.msra.mxu0 %v1198_v37 }
  0x5c   :  { %682 = vmatprep.subr.bf16.mxu0 %v1199_v39 }
  0x5d   :  { %718 = vmatpush1.bf16.msra.mxu1 %v1189_v33  ;;  %v118_v33 = vrot.slane %v101_v16, %v117_v24 }
  0x5e   :  { %719 = vmatprep.subr.bf16.mxu1 %v1197_v36 }
  0x5f   :  { %683 = vmatpush2.bf16.msra.mxu0 %v1204_v42 }
  0x60   :  { %684 = vmatprep.subr.bf16.mxu0 %v1205_v43 }
  0x61   :  { %720 = vmatpush1.bf16.msra.mxu1 %v1195_v38  ;;  %v1254_v38 = vld [vmem:[#allocation9 + $0x38] sm:$0xff]  }
  0x62   :  { %721 = vmatprep.subr.bf16.mxu1 %v1203_v40 }
  0x63   :  { %685 = vmatpush2.bf16.msra.mxu0 %v1210_v45 }
  0x64   :  { %686 = vmatprep.subr.bf16.mxu0 %v1211_v47  ;;  %v1256_v47 = vld [vmem:[#allocation9 + $0x30] sm:$0xff]  }
  0x65   :  { %722 = vmatpush1.bf16.msra.mxu1 %v1201_v41  ;;  %v1255_v41 = vld [vmem:[#allocation9 + $0x70] sm:$0xff]  }
  0x66   :  { %723 = vmatprep.subr.bf16.mxu1 %v1209_v44 }
  0x67   :  { %687 = vmatpush2.bf16.msra.mxu0 %v1216_v49  ;;  %v1257_v49 = vld [vmem:[#allocation9 + $0x68] sm:$0xff]  }
  0x68   :  { %688 = vmatprep.subr.bf16.mxu0 %v1217_v51 }
  0x69   :  { %724 = vmatpush1.bf16.msra.mxu1 %v1207_v46 }
  0x6a   :  { %725 = vmatprep.subr.bf16.mxu1 %v1215_v48 }
  0x6b   :  { %689 = vmatpush2.bf16.msra.mxu0 %v1222_v53 }
  0x6c   :  { %690 = vmatprep.subr.bf16.mxu0 %v1223_v55 }
  0x6d   :  { %726 = vmatpush2.bf16.msra.mxu1 %v1213_v50 }
  0x6e   :  { %727 = vmatprep.subr.bf16.mxu1 %v1221_v52 }
  0x6f   :  { %691 = vmatpush2.bf16.msra.mxu0 %v1228_v57  ;;  %v1260_v57 = vld [vmem:[#allocation9 + $0x20] sm:$0xff]  }
  0x70   :  { %692 = vmatprep.subr.bf16.mxu0 %v1229_v59  ;;  %v1262_v59 = vld [vmem:[#allocation9 + $0x18] sm:$0xff]  }
  0x71   :  { %728 = vmatpush2.bf16.msra.mxu1 %v1219_v54  ;;  %v1258_v54 = vld [vmem:[#allocation9 + $0x28] sm:$0xff]  }
  0x72   :  { %729 = vmatprep.subr.bf16.mxu1 %v1227_v56  ;;  %v1259_v56 = vld [vmem:[#allocation9 + $0x60] sm:$0xff]  }
  0x73   :  { %693 = vmatpush2.bf16.msra.mxu0 %v1234_v62  ;;  %v1265_v62 = vld [vmem:[#allocation9 + $0x48] sm:$0xff]  }
  0x74   :  { %694 = vmatprep.subr.bf16.mxu0 %v1235_v63  ;;  %v1266_v63 = vld [vmem:[#allocation9 + $0x8] sm:$0xff]  }
  0x75   :  { %730 = vmatpush2.bf16.msra.mxu1 %v1225_v58  ;;  %v1261_v58 = vld [vmem:[#allocation9 + $0x58] sm:$0xff]  }
  0x76   :  { %731 = vmatprep.subr.bf16.mxu1 %v1233_v60  ;;  %v1263_v60 = vld [vmem:[#allocation9 + $0x50] sm:$0xff]  }
  0x77   :  { %695 = vmatpush2.bf16.msra.mxu0 %v1240_v2 }
  0x78   :  { %696 = vmatprep.subr.bf16.mxu0 %v1241_v3 }
  0x79   :  { %732 = vmatpush2.bf16.msra.mxu1 %v1231_v61  ;;  %v1264_v61 = vld [vmem:[#allocation9 + $0x10] sm:$0xff]  }
  0x7a   :  { %733 = vmatprep.subr.bf16.mxu1 %v1239_v0  ;;  %v1267_v0 = vld [vmem:[#allocation9 + $0x40] sm:$0xff]  }
  0x7b   :  { %697 = vmatpush2.bf16.msra.mxu0 %v1246_v6 }
  0x7c   :  { %1099 = vmatprep.subr.bf16.mxu0 %v1253_v11 }
  0x7d   :  { %734 = vmatpush2.bf16.msra.mxu1 %v1237_v1  ;;  %v1268_v1 = vld [vmem:[#allocation9] sm:$0xff]  }
  0x7e   :  { %735 = vmatprep.subr.bf16.mxu1 %v1245_v4  ;;  %v334_v4 = vld [vmem:[%s1492_s4] sm:$0x3] }
  0x7f   :  { %v343_v6 = vrot.slane %v334_v4, %v109_v14 }
  0x81   :  { %736 = vmatpush2.bf16.msra.mxu1 %v1243_v5 }
  0x82   :  { %737 = vmatprep.subr.bf16.mxu1 %v1249_v7  ;;  %v339_v7 = vrot.slane %v334_v4, %v1462_v15 }
  0x85   :  { %738 = vmatpush2.bf16.msra.mxu1 %v1247_v8 }
  0x86   :  { %739 = vmatprep.subr.bf16.mxu1 %v1252_v9 }
  0x89   :  { %740 = vmatpush2.bf16.msra.mxu1 %v1250_v10 }
 0x104   :  { %v206_v17 = vpop.f32.mrf.mxu1 }
 0x105   :  { %v207_v25 = vadd.f32 %v206_v17, %v106_v19 }
 0x106   :  { %v208_v20 = vpop.f32.mrf.mxu1 }
 0x107   :  { %v209_v22 = vadd.f32 %v208_v20, %v110_v18  ;;  %v258_v34 = vmax.f32 %v207_v25, 0.0 }
 0x108   :  { %v210_v21 = vpop.f32.mrf.mxu1 }
 0x109   :  { %v211_v23 = vadd.f32 %v210_v21, %v106_v19  ;;  %v259_v31 = vmax.f32 %v209_v22, 0.0 }
 0x10a   :  { %v212_v26 = vpop.f32.mrf.mxu1 }
 0x10b   :  { %v213_v28 = vadd.f32 %v212_v26, %v110_v18  ;;  %v262_v29 = vmax.f32 %v211_v23, 0.0 }
 0x10c   :  { %v249_v30 = vpop.f32.mrf.mxu1 }
 0x10d   :  { %v263_v32 = vmax.f32 %v213_v28, 0.0  ;;  %v266_v39 = vpack.c.bf16 %v262_v29, %v258_v34  ;;  %v250_v44 = vadd.f32 %v249_v30, %v114_v35  ;;  %v1388_v28 = vmov 0.0   ;;  %v938_v29 = vld [vmem:[#allocation2] sm:$0x1] }
 0x10e   :  { %v251_v36 = vpop.f32.mrf.mxu1  ;;  %1123 = vmatprep.subr.bf16.mxu1 %v1388_v28  ;;  %941 = vperm.xlu0 %1143, %v938_v29  }
 0x10f   :  { %v267_v37 = vpack.c.bf16 %v263_v32, %v259_v31  ;;  %v252_v42 = vadd.f32 %v251_v36, %v118_v33  ;;  %v260_v52 = vmax.f32 %v250_v44, 0.0 }
 0x110   :  { %v253_v40 = vpop.f32.mrf.mxu1 }
 0x111   :  { %v254_v43 = vadd.f32 %v253_v40, %v114_v35  ;;  %698 = vmatprep.mubr.bf16.mxu0 %v267_v37  ;;  %v261_v50 = vmax.f32 %v252_v42, 0.0  ;;  %v937_v42 = vld [vmem:[%s1495_s7] sm:$0x1] }
 0x112   :  { %v255_v45 = vpop.f32.mrf.mxu1  ;;  %699 = vmatmul.mubr.bf16.vlgmr.msra.gmra.mxu0 %v266_v39 }
 0x113   :  { %v256_v46 = vadd.f32 %v255_v45, %v118_v33  ;;  %1100 = vmatpush3.bf16.msra.mxu0 %v1254_v38  ;;  %v264_v48 = vmax.f32 %v254_v43, 0.0  ;;  %v1082_v33 = vld [vmem:[%s1494_s6] ss:$0 sm:$0xff]  ;;  %s1349_s6 = scalar_lea.vmem %s997_s8, 16 }
 0x114   :  { %1101 = vmatprep.subr.bf16.mxu0 %v1255_v41  ;;  %p1350_p6 = scmp.ne.s32.totalorder %s997_s8, %s1349_s6  ;;  %p1355_p8 = scmp.lt.s32.totalorder %s1353_s18, %s1349_s6 }
 0x115   :  { %v265_v51 = vmax.f32 %v256_v46, 0.0  ;;  %v268_v55 = vpack.c.bf16 %v264_v48, %v260_v52 }
 0x116   :  { %p1356_p9 = por %p1355_p8, %p1354_p7 }
 0x117   :  { %v269_v53 = vpack.c.bf16 %v265_v51, %v261_v50  ;;  %1102 = vmatpush3.bf16.msra.mxu0 %v1256_v47 }
 0x118   :  { %1103 = vmatprep.subr.bf16.mxu0 %v1257_v49  ;;  %p1357_p10 = pnand %p1356_p9, %p1350_p6 }
 0x119   :  { %741 = vmatprep.mubr.bf16.mxu1 %v269_v53 }
 0x11a   :  { %742 = vmatmul.mubr.bf16.vlgmr.msra.gmra.mxu1 %v268_v55 }
 0x11b   :  { %1104 = vmatpush3.bf16.msra.mxu0 %v1258_v54  ;;  %1125 = vmatprep.mubr.msk.bf16.mxu1 %vm1389_vm1, %v1388_v28 }
 0x11c   :  { %1105 = vmatprep.subr.bf16.mxu0 %v1259_v56 }
 0x11f   :  { %1106 = vmatpush3.bf16.msra.mxu0 %v1260_v57 }
 0x120   :  { %1107 = vmatprep.subr.bf16.mxu0 %v1261_v58 }
 0x123   :  { %1108 = vmatpush3.bf16.msra.mxu0 %v1262_v59 }
 0x124   :  { %1109 = vmatprep.subr.bf16.mxu0 %v1263_v60 }
 0x127   :  { %1110 = vmatpush3.bf16.msra.mxu0 %v1264_v61 }
 0x128   :  { %1111 = vmatprep.subr.bf16.mxu0 %v1265_v62 }
 0x12b   :  { %1112 = vmatpush3.bf16.msra.mxu0 %v1266_v63 }
 0x12c   :  { %1113 = vmatprep.subr.bf16.mxu0 %v1267_v0 }
 0x12f   :  { %1114 = vmatpush3.bf16.msra.mxu0 %v1268_v1 }
 0x189   :  { %v942_v43 = vpop.permute.xlu0 %941 }
 0x18a   :  { %v947_v44 = vrot.slane %v942_v43, %v1462_v15 }
 0x1d2   :  { %v700_v2 = vpop.f32.mrf.mxu0 }
 0x1d3   :  { %v701_v16 = vadd.f32 %v700_v2, %v339_v7 }
 0x1d4   :  { %v702_v3 = vpop.f32.mrf.mxu0 }
 0x1d5   :  { %v703_v11 = vadd.f32 %v702_v3, %v343_v6 }
 0x1d6   :  { %v704_v5 = vpop.f32.mrf.mxu0 }
 0x1d7   :  { %v705_v12 = vadd.f32 %v704_v5, %v339_v7 }
 0x1d8   :  { %v706_v9 = vpop.f32.mrf.mxu0 }
 0x1d9   :  { %v707_v18 = vadd.f32 %v706_v9, %v343_v6 }
 0x1da   :  { %v743_v8 = vpop.f32.mrf.mxu1 }
 0x1db   :  { %v744_v21 = vadd.f32 %v743_v8, %v701_v16 }
 0x1dc   :  { %v745_v10 = vpop.f32.mrf.mxu1 }
 0x1dd   :  { %v746_v19 = vadd.f32 %v745_v10, %v703_v11  ;;  %v752_v13 = vmax.f32 %v744_v21, 0.0 }
 0x1de   :  { %v747_v17 = vpop.f32.mrf.mxu1 }
 0x1df   :  { %v748_v20 = vadd.f32 %v747_v17, %v705_v12  ;;  %v753_v25 = vmax.f32 %v746_v19, 0.0 }
 0x1e0   :  { %v749_v22 = vpop.f32.mrf.mxu1 }
 0x1e1   :  { %v750_v23 = vadd.f32 %v749_v22, %v707_v18  ;;  %v754_v24 = vmax.f32 %v748_v20, 0.0 }
 0x1e3   :  { %v755_v26 = vmax.f32 %v750_v23, 0.0  ;;  %v756_v27 = vpack.c.bf16 %v754_v24, %v752_v13 }
 0x1e5   :  { %v757_v14 = vpack.c.bf16 %v755_v26, %v753_v25 }
 0x1e7   :  { %925 = vmatprep.mubr.bf16.mxu0 %v757_v14 }
 0x1e8   :  { %926 = vmatmul.mubr.bf16.vlgmr.msra.gmra.mxu0 %v756_v27 }
 0x2a8   :  { %v1115_v30 = vpop.f32.mrf.mxu0 }
 0x2aa   :  { %v1116_v31 = vpop.f32.mrf.mxu0 }
 0x2ab   :  { %v1117_v32 = vadd.f32 %v1116_v31, %v1115_v30 }
 0x2ac   :  { %v1118_v34 = vpop.f32.mrf.mxu0 }
 0x2ad   :  { %v928_v36 = vadd.f32 %v1117_v32, %v1082_v33 }
 0x2ae   :  { %v1119_v35 = vpop.f32.mrf.mxu0 }
 0x2af   :  { %v1120_v37 = vadd.f32 %v1119_v35, %v1118_v34  ;;  %v934_v39 = vmax.f32 %v928_v36, 0.0 }
 0x2b1   :  { %v931_v38 = vadd.f32 %v1120_v37, %v1082_v33 }
 0x2b3   :  { %v935_v40 = vmax.f32 %v931_v38, 0.0 }
 0x2b5   :  { %v936_v41 = vpack.c.bf16 %v935_v40, %v934_v39 }
 0x2b7   :  { %1124 = vmatpush3.bf16.xpose.msra.mxu1 %v936_v41 }
 0x2be   :  { %1126 = vmatmul.mubr.bf16.vlgmr.msra.gmra.mxu1 %v937_v42 }
 0x37e   :  { %v982_v45 = vpop.f32.mrf.mxu1 }
 0x37f   :  { %v983_v46 = vadd.f32 %v982_v45, %v947_v44 }
 0x380   :  { %v1127_v47 = vpop.f32.mrf.mxu1 }
 0x381   :  { %989 = vst.msk [vmem:[#allocation11] sm:$0x1] %vm988_vm2, %v983_v46 }
 0x382   :  { %v985_v48 = vpop.f32.mrf.mxu1 }
 0x383   :  { %1360 = shalt.err (!%p1357_p10)
}
 0x384   :  { %999 = dma.vmem_to_hbm [thread:$0]  %s997_s8, 16, %s1497_s9, [#allocation5]   ;;  %v1128_v15 = vpop.f32.mrf.mxu1 }
 0x385   :  { %1375 = dma.done.wait [#allocation5], 16  }
 0x386   :  { %1376 = vsyncadd [#allocation5], 4294967280 }
 0x387   :  { %1003 = vsyncpa [#allocation4], 1 }
 0x388   :  { %1004 = vsyncpa [#allocation7], 1 }
 0x389   :  { %1005 = vsyncpa [#allocation10], 1 }
 0x38a   :  { %1006 = vsyncpa [#allocation5], 1 }

</bundles_post_ra>
